<compile_context>
chip_gen: v7x
topology: tpu7x:2x2x1
jax: 0.10.0
libtpu: 0.0.40
codegen_flags: <defaults>
</compile_context>

<pallas_src>
import functools

import jax
import jax.numpy as jnp
import numpy as np
from jax import lax
from jax.experimental import pallas as pl
from jax.experimental.pallas import tpu as pltpu


def _two_region_rnn_kernel(
    ix1_ref,     # (L, B, H1)  precomputed inputs[0] @ w1_ih + b1
    ix2_ref,     # (L, B, H2)  precomputed inputs[1] @ w2_in + b2_eff
    h1_0_ref,    # (B, H1)     initial hidden state, region 1
    h2_0_ref,    # (B, H2)     initial hidden state, region 2
    w1_hh_ref,   # (H1, H1)    region-1 recurrent weight (transposed vs torch)
    w_blk_ref,   # (H1+H2, H2) [ wl1[:, :dout0-1] @ w2_ofc ; w2_hh ]
    h1_all_ref,  # out: (L, B, H1)  region-1 hidden states for every step
    h2_all_ref,  # out: (L, B, H2)  region-2 hidden states for every step
):
    L = ix1_ref.shape[0]
    w1_hh = w1_hh_ref[...]
    w_blk = w_blk_ref[...]

    def body(k, carry):
        h1, h2 = carry
        # region 1 Elman cell: only the recurrent matmul remains in the loop.
        h1 = jnp.tanh(
            ix1_ref[k] + jnp.dot(h1, w1_hh, preferred_element_type=jnp.float32)
        )
        # region 2: single merged MXU push on [h1_new, h2_old] (ofc-feedback folded in).
        h12 = jnp.concatenate([h1, h2], axis=1)
        h2 = jnp.tanh(
            ix2_ref[k] + jnp.dot(h12, w_blk, preferred_element_type=jnp.float32)
        )
        h1_all_ref[k] = h1
        h2_all_ref[k] = h2
        return h1, h2

    # L is static and small -> fully unroll so the LLO scheduler can overlap
    # MXU latency, EUP tanh and the hidden-state stores across iterations.
    lax.fori_loop(0, L, body, (h1_0_ref[...], h2_0_ref[...]), unroll=True)


def _run_kernel(ix1, ix2, h1_0, h2_0, w1_hh, w_blk):
    L, B, H1 = ix1.shape
    H2 = ix2.shape[2]
    vmem = functools.partial(pl.BlockSpec, memory_space=pltpu.MemorySpace.VMEM)
    out_shape = (
        jax.ShapeDtypeStruct((L, B, H1), jnp.float32),
        jax.ShapeDtypeStruct((L, B, H2), jnp.float32),
    )
    # Shapes are tiny (a few KiB) -> whole arrays resident in VMEM, no grid.
    # TODO(synk): for training-scale L*B, add a batch grid ("parallel") so v7x's
    # second TensorCore is used and VMEM residency stays bounded.
    return pl.pallas_call(
        _two_region_rnn_kernel,
        out_shape=out_shape,
        in_specs=[vmem() for _ in range(6)],
        out_specs=tuple(vmem() for _ in out_shape),
    )(ix1, ix2, h1_0, h2_0, w1_hh, w_blk)


def forward(inputs, state, params, isITI=False):
    """JAX/Pallas version of RNNModel_multiregion_2.forward (rnntype='RNN', snr=0)."""
    inp1, inp2 = inputs
    h1_0 = state[0][0]  # (B, H1)
    h2_0 = state[1][0]  # (B, H2)
    B, L, _ = inp1.shape
    H1 = params["w1_hh"].shape[0]
    H2 = params["w2_hh"].shape[0]
    dout0 = params["wl1"].shape[1]
    dout1 = params["wl2"].shape[1]

    # --- fold region-1 readout (linear1) into the region-2 recurrence ---
    w1_to_2 = params["wl1"][:, : dout0 - 1] @ params["w2_ofc"]               # (H1, H2)
    b2_eff = params["b2"] + params["bl1"][:, : dout0 - 1] @ params["w2_ofc"]  # (1, H2)
    w_blk = jnp.concatenate([w1_to_2, params["w2_hh"]], axis=0)               # (H1+H2, H2)

    # --- hoisted batched input projections, produced directly time-major ---
    ix1 = jnp.einsum("bld,dh->lbh", inp1, params["w1_ih"]) + params["b1"]     # (L, B, H1)
    ix2 = jnp.einsum("bld,dh->lbh", inp2, params["w2_in"]) + b2_eff           # (L, B, H2)

    h1_all, h2_all = _run_kernel(ix1, ix2, h1_0, h2_0, params["w1_hh"], w_blk)

    # batch-first flatten (matches torch's Y.reshape((-1, d)) on batch-first tensors)
    H1_bl = jnp.transpose(h1_all, (1, 0, 2)).reshape(B * L, H1)
    H2_bl = jnp.transpose(h2_all, (1, 0, 2)).reshape(B * L, H2)

    # deferred readouts: two batched matmuls instead of per-timestep tiny matmuls
    Y1 = H1_bl @ params["wl1"] + params["bl1"]      # (B*L, dout0)
    out2 = H2_bl @ params["wl2"] + params["bl2"]    # (B*L, dout1)

    pred_activations = Y1[:, : dout0 - 1]
    output_supervised_ofc = Y1[:, dout0 - 1: dout0]            # (B*L, 1)
    output_supervised_dms = out2[:, 4:6]
    output_supervised = jnp.concatenate(
        [output_supervised_dms, output_supervised_ofc], axis=1)
    if dout1 > 6:
        output_sham = out2[:, 6:]
    else:
        output_sham = jnp.array(jnp.nan, dtype=jnp.float32)

    pi_activation = out2[:, :3]
    if isITI:
        pi_activation = pi_activation.at[:, :2].set(-1000.0)
    else:
        pi_activation = pi_activation.at[:, 2].set(-1000.0)
    output_policy = jax.nn.softmax(pi_activation, axis=1)
    output_value = out2[:, 3]

    state1 = h1_all[L - 1][None]   # (1, B, H1)
    state2 = h2_all[L - 1][None]   # (1, B, H2)   (snr = 0 -> no noise)

    return {
        "policy": output_policy,
        "value": output_value,
        "state": [state1, state2],
        "activations": pred_activations,
        "pred_supervised": output_supervised,
        "output_sham": output_sham,
    }


def init_params(key, din, dout, num_hiddens):
    """Deterministic synthetic parameters matching the PyTorch module's shapes.

    rnn1: nn.RNN(din[0], H1);  rnn2: nn.RNN(dout[0]+din[1]-1, H2)
    linear1: (H1 -> dout[0]);  linear2: (H2 -> dout[1])
    Weights stored transposed ((in, out)) so kernels compute x @ W.
    """
    H1, H2 = num_hiddens
    din0, din1 = din
    dout0, dout1 = dout
    in2 = dout0 + din1 - 1  # rnn2 input size

    keys = jax.random.split(key, 12)

    def u(k, shape, fan):
        bound = 1.0 / np.sqrt(fan)
        return jax.random.uniform(k, shape, jnp.float32, -bound, bound)

    w2_ih = u(keys[4], (in2, H2), H2)  # (in2, H2), transposed vs torch
    params = {
        "w1_ih": u(keys[0], (din0, H1), H1),
        "w1_hh": u(keys[1], (H1, H1), H1),
        "b1": u(keys[2], (1, H1), H1) + u(keys[3], (1, H1), H1),  # b_ih + b_hh
        "w2_in": w2_ih[:din1, :],            # acts on raw inputs[1]
        "w2_ofc": w2_ih[din1:, :],           # acts on ofc feedback (dout0-1 cols)
        "w2_hh": u(keys[5], (H2, H2), H2),
        "b2": u(keys[6], (1, H2), H2) + u(keys[7], (1, H2), H2),
        "wl1": u(keys[8], (H1, dout0), H1),
        "bl1": u(keys[9], (1, dout0), H1),
        "wl2": u(keys[10], (H2, dout1), H2),
        "bl2": u(keys[11], (1, dout1), H2),
    }
    return params


def _reference_forward(inputs, state, params, isITI=False):
    """Pure-JAX reference mirroring the PyTorch semantics exactly (no folding)."""
    inp1, inp2 = inputs
    B, L, _ = inp1.shape
    dout0 = params["wl1"].shape[1]
    h1 = state[0][0]
    h2 = state[1][0]
    Y1s, O2s = [], []
    for k in range(L):
        h1 = jnp.tanh(inp1[:, k] @ params["w1_ih"] + h1 @ params["w1_hh"] + params["b1"])
        y1 = h1 @ params["wl1"] + params["bl1"]
        Y1s.append(y1)
        ofc = y1[:, : dout0 - 1]
        h2 = jnp.tanh(inp2[:, k] @ params["w2_in"] + ofc @ params["w2_ofc"]
                      + h2 @ params["w2_hh"] + params["b2"])
        O2s.append(h2 @ params["wl2"] + params["bl2"])
    Y1 = jnp.stack(Y1s, axis=1).reshape(B * L, -1)
    out2 = jnp.stack(O2s, axis=1).reshape(B * L, -1)
    pi = out2[:, :3]
    pi = pi.at[:, :2].set(-1000.0) if isITI else pi.at[:, 2].set(-1000.0)
    return {
        "policy": jax.nn.softmax(pi, axis=1),
        "value": out2[:, 3],
        "activations": Y1[:, : dout0 - 1],
        "pred_supervised": jnp.concatenate(
            [out2[:, 4:6], Y1[:, dout0 - 1: dout0]], axis=1),
        "state": [h1[None], h2[None]],
    }


if __name__ == "__main__":
    # Small shapes consistent with the module (inputcase 11: din=[D, 2]).
    din = [6, 2]
    dout = [6, 6]
    num_hiddens = [32, 32]
    B, L = 2, 8

    key = jax.random.PRNGKey(0)
    kp, k1, k2, kh1, kh2 = jax.random.split(key, 5)
    params = init_params(kp, din, dout, num_hiddens)

    inp = jax.random.normal(k1, (B, L, din[0]), dtype=jnp.float32)
    # parseiputs, inputcase 11: inp1 = inp, inp2 = inp[:, :, 0:2]
    inputs = [inp, inp[:, :, 0:2]]
    state = [
        jax.random.uniform(kh1, (1, B, num_hiddens[0]), dtype=jnp.float32),
        jax.random.uniform(kh2, (1, B, num_hiddens[1]), dtype=jnp.float32),
    ]

    out = forward(inputs, state, params, isITI=False)
    jax.block_until_ready(out["policy"])

    ref = _reference_forward(inputs, state, params, isITI=False)
    # The weight folding (wl1-slice @ w2_ofc) changes FP association slightly;
    # keep a tight-but-realistic tolerance.
    rtol, atol = 2e-4, 2e-5
    np.testing.assert_allclose(np.asarray(out["policy"]),
                               np.asarray(ref["policy"]), rtol=rtol, atol=atol)
    np.testing.assert_allclose(np.asarray(out["value"]),
                               np.asarray(ref["value"]), rtol=rtol, atol=atol)
    np.testing.assert_allclose(np.asarray(out["activations"]),
                               np.asarray(ref["activations"]), rtol=rtol, atol=atol)
    np.testing.assert_allclose(np.asarray(out["pred_supervised"]),
                               np.asarray(ref["pred_supervised"]), rtol=rtol, atol=atol)
    np.testing.assert_allclose(np.asarray(out["state"][0]),
                               np.asarray(ref["state"][0]), rtol=rtol, atol=atol)
    np.testing.assert_allclose(np.asarray(out["state"][1]),
                               np.asarray(ref["state"][1]), rtol=rtol, atol=atol)

    print("KERNEL_OK")
</pallas_src>

<mosaic_0001>
module attributes {stable_mosaic.version = 11 : i64} {
  func.func @_two_region_rnn_kernel(%arg0: memref<8x2x32xf32, #tpu.memory_space<vmem>>, %arg1: memref<8x2x32xf32, #tpu.memory_space<vmem>>, %arg2: memref<2x32xf32, #tpu.memory_space<vmem>>, %arg3: memref<2x32xf32, #tpu.memory_space<vmem>>, %arg4: memref<32x32xf32, #tpu.memory_space<vmem>>, %arg5: memref<64x32xf32, #tpu.memory_space<vmem>>, %arg6: memref<8x2x32xf32, #tpu.memory_space<vmem>>, %arg7: memref<8x2x32xf32, #tpu.memory_space<vmem>>) attributes {dimension_semantics = [], scalar_prefetch = 0 : i64, scratch_operands = 0 : i64, tpu.core_type = #tpu.core_type<tc>} {
    %c0 = arith.constant 0 : index
    %c0_0 = arith.constant 0 : index
    %0 = vector.load %arg4[%c0, %c0_0] : memref<32x32xf32, #tpu.memory_space<vmem>>, vector<32x32xf32>
    %c0_1 = arith.constant 0 : index
    %c0_2 = arith.constant 0 : index
    %1 = vector.load %arg5[%c0_1, %c0_2] : memref<64x32xf32, #tpu.memory_space<vmem>>, vector<64x32xf32>
    %c0_3 = arith.constant 0 : index
    %c0_4 = arith.constant 0 : index
    %2 = vector.load %arg2[%c0_3, %c0_4] : memref<2x32xf32, #tpu.memory_space<vmem>>, vector<2x32xf32>
    %c0_5 = arith.constant 0 : index
    %c0_6 = arith.constant 0 : index
    %3 = vector.load %arg3[%c0_5, %c0_6] : memref<2x32xf32, #tpu.memory_space<vmem>>, vector<2x32xf32>
    %c0_i32 = arith.constant 0 : i32
    %4 = arith.index_cast %c0_i32 : i32 to index
    %c0_7 = arith.constant 0 : index
    %c0_8 = arith.constant 0 : index
    %5 = vector.load %arg0[%4, %c0_7, %c0_8] : memref<8x2x32xf32, #tpu.memory_space<vmem>>, vector<1x2x32xf32>
    %6 = vector.shape_cast %5 : vector<1x2x32xf32> to vector<2x32xf32>
    %cst = arith.constant dense<0.000000e+00> : vector<2x32xf32>
    %7 = tpu.matmul %2, %0, %cst {dimension_numbers = #tpu.dot_dimension_numbers<[1], [0], [0], [1], [0, 0, 1, 1], [], []>} : vector<2x32xf32>, vector<32x32xf32>, vector<2x32xf32> -> vector<2x32xf32>
    %8 = arith.addf %6, %7 : vector<2x32xf32>
    %9 = math.tanh %8 : vector<2x32xf32>
    %10 = tpu.concatenate %9, %3 in 1 : vector<2x32xf32>, vector<2x32xf32> -> vector<2x64xf32>
    %11 = arith.index_cast %c0_i32 : i32 to index
    %c0_9 = arith.constant 0 : index
    %c0_10 = arith.constant 0 : index
    %12 = vector.load %arg1[%11, %c0_9, %c0_10] : memref<8x2x32xf32, #tpu.memory_space<vmem>>, vector<1x2x32xf32>
    %13 = vector.shape_cast %12 : vector<1x2x32xf32> to vector<2x32xf32>
    %cst_11 = arith.constant dense<0.000000e+00> : vector<2x32xf32>
    %14 = tpu.matmul %10, %1, %cst_11 {dimension_numbers = #tpu.dot_dimension_numbers<[1], [0], [0], [1], [0, 0, 1, 1], [], []>} : vector<2x64xf32>, vector<64x32xf32>, vector<2x32xf32> -> vector<2x32xf32>
    %15 = arith.addf %13, %14 : vector<2x32xf32>
    %16 = math.tanh %15 : vector<2x32xf32>
    %17 = arith.index_cast %c0_i32 : i32 to index
    %c0_12 = arith.constant 0 : index
    %c0_13 = arith.constant 0 : index
    %18 = vector.load %arg6[%17, %c0_12, %c0_13] : memref<8x2x32xf32, #tpu.memory_space<vmem>>, vector<1x2x32xf32>
    %19 = vector.shape_cast %18 : vector<1x2x32xf32> to vector<2x32xf32>
    %20 = vector.shape_cast %9 : vector<2x32xf32> to vector<1x2x32xf32>
    tpu.vector_store %arg6[%17, %c0_12, %c0_13], %20 {strides = array<i32>} : memref<8x2x32xf32, #tpu.memory_space<vmem>>, vector<1x2x32xf32>,
    %21 = arith.index_cast %c0_i32 : i32 to index
    %c0_14 = arith.constant 0 : index
    %c0_15 = arith.constant 0 : index
    %22 = vector.load %arg7[%21, %c0_14, %c0_15] : memref<8x2x32xf32, #tpu.memory_space<vmem>>, vector<1x2x32xf32>
    %23 = vector.shape_cast %22 : vector<1x2x32xf32> to vector<2x32xf32>
    %24 = vector.shape_cast %16 : vector<2x32xf32> to vector<1x2x32xf32>
    tpu.vector_store %arg7[%21, %c0_14, %c0_15], %24 {strides = array<i32>} : memref<8x2x32xf32, #tpu.memory_space<vmem>>, vector<1x2x32xf32>,
    %c1_i32 = arith.constant 1 : i32
    %25 = arith.index_cast %c1_i32 : i32 to index
    %c0_16 = arith.constant 0 : index
    %c0_17 = arith.constant 0 : index
    %26 = vector.load %arg0[%25, %c0_16, %c0_17] : memref<8x2x32xf32, #tpu.memory_space<vmem>>, vector<1x2x32xf32>
    %27 = vector.shape_cast %26 : vector<1x2x32xf32> to vector<2x32xf32>
    %cst_18 = arith.constant dense<0.000000e+00> : vector<2x32xf32>
    %28 = tpu.matmul %9, %0, %cst_18 {dimension_numbers = #tpu.dot_dimension_numbers<[1], [0], [0], [1], [0, 0, 1, 1], [], []>} : vector<2x32xf32>, vector<32x32xf32>, vector<2x32xf32> -> vector<2x32xf32>
    %29 = arith.addf %27, %28 : vector<2x32xf32>
    %30 = math.tanh %29 : vector<2x32xf32>
    %31 = tpu.concatenate %30, %16 in 1 : vector<2x32xf32>, vector<2x32xf32> -> vector<2x64xf32>
    %32 = arith.index_cast %c1_i32 : i32 to index
    %c0_19 = arith.constant 0 : index
    %c0_20 = arith.constant 0 : index
    %33 = vector.load %arg1[%32, %c0_19, %c0_20] : memref<8x2x32xf32, #tpu.memory_space<vmem>>, vector<1x2x32xf32>
    %34 = vector.shape_cast %33 : vector<1x2x32xf32> to vector<2x32xf32>
    %cst_21 = arith.constant dense<0.000000e+00> : vector<2x32xf32>
    %35 = tpu.matmul %31, %1, %cst_21 {dimension_numbers = #tpu.dot_dimension_numbers<[1], [0], [0], [1], [0, 0, 1, 1], [], []>} : vector<2x64xf32>, vector<64x32xf32>, vector<2x32xf32> -> vector<2x32xf32>
    %36 = arith.addf %34, %35 : vector<2x32xf32>
    %37 = math.tanh %36 : vector<2x32xf32>
    %38 = arith.index_cast %c1_i32 : i32 to index
    %c0_22 = arith.constant 0 : index
    %c0_23 = arith.constant 0 : index
    %39 = vector.load %arg6[%38, %c0_22, %c0_23] : memref<8x2x32xf32, #tpu.memory_space<vmem>>, vector<1x2x32xf32>
    %40 = vector.shape_cast %39 : vector<1x2x32xf32> to vector<2x32xf32>
    %41 = vector.shape_cast %30 : vector<2x32xf32> to vector<1x2x32xf32>
    tpu.vector_store %arg6[%38, %c0_22, %c0_23], %41 {strides = array<i32>} : memref<8x2x32xf32, #tpu.memory_space<vmem>>, vector<1x2x32xf32>,
    %42 = arith.index_cast %c1_i32 : i32 to index
    %c0_24 = arith.constant 0 : index
    %c0_25 = arith.constant 0 : index
    %43 = vector.load %arg7[%42, %c0_24, %c0_25] : memref<8x2x32xf32, #tpu.memory_space<vmem>>, vector<1x2x32xf32>
    %44 = vector.shape_cast %43 : vector<1x2x32xf32> to vector<2x32xf32>
    %45 = vector.shape_cast %37 : vector<2x32xf32> to vector<1x2x32xf32>
    tpu.vector_store %arg7[%42, %c0_24, %c0_25], %45 {strides = array<i32>} : memref<8x2x32xf32, #tpu.memory_space<vmem>>, vector<1x2x32xf32>,
    %c2_i32 = arith.constant 2 : i32
    %46 = arith.index_cast %c2_i32 : i32 to index
    %c0_26 = arith.constant 0 : index
    %c0_27 = arith.constant 0 : index
    %47 = vector.load %arg0[%46, %c0_26, %c0_27] : memref<8x2x32xf32, #tpu.memory_space<vmem>>, vector<1x2x32xf32>
    %48 = vector.shape_cast %47 : vector<1x2x32xf32> to vector<2x32xf32>
    %cst_28 = arith.constant dense<0.000000e+00> : vector<2x32xf32>
    %49 = tpu.matmul %30, %0, %cst_28 {dimension_numbers = #tpu.dot_dimension_numbers<[1], [0], [0], [1], [0, 0, 1, 1], [], []>} : vector<2x32xf32>, vector<32x32xf32>, vector<2x32xf32> -> vector<2x32xf32>
    %50 = arith.addf %48, %49 : vector<2x32xf32>
    %51 = math.tanh %50 : vector<2x32xf32>
    %52 = tpu.concatenate %51, %37 in 1 : vector<2x32xf32>, vector<2x32xf32> -> vector<2x64xf32>
    %53 = arith.index_cast %c2_i32 : i32 to index
    %c0_29 = arith.constant 0 : index
    %c0_30 = arith.constant 0 : index
    %54 = vector.load %arg1[%53, %c0_29, %c0_30] : memref<8x2x32xf32, #tpu.memory_space<vmem>>, vector<1x2x32xf32>
    %55 = vector.shape_cast %54 : vector<1x2x32xf32> to vector<2x32xf32>
    %cst_31 = arith.constant dense<0.000000e+00> : vector<2x32xf32>
    %56 = tpu.matmul %52, %1, %cst_31 {dimension_numbers = #tpu.dot_dimension_numbers<[1], [0], [0], [1], [0, 0, 1, 1], [], []>} : vector<2x64xf32>, vector<64x32xf32>, vector<2x32xf32> -> vector<2x32xf32>
    %57 = arith.addf %55, %56 : vector<2x32xf32>
    %58 = math.tanh %57 : vector<2x32xf32>
    %59 = arith.index_cast %c2_i32 : i32 to index
    %c0_32 = arith.constant 0 : index
    %c0_33 = arith.constant 0 : index
    %60 = vector.load %arg6[%59, %c0_32, %c0_33] : memref<8x2x32xf32, #tpu.memory_space<vmem>>, vector<1x2x32xf32>
    %61 = vector.shape_cast %60 : vector<1x2x32xf32> to vector<2x32xf32>
    %62 = vector.shape_cast %51 : vector<2x32xf32> to vector<1x2x32xf32>
    tpu.vector_store %arg6[%59, %c0_32, %c0_33], %62 {strides = array<i32>} : memref<8x2x32xf32, #tpu.memory_space<vmem>>, vector<1x2x32xf32>,
    %63 = arith.index_cast %c2_i32 : i32 to index
    %c0_34 = arith.constant 0 : index
    %c0_35 = arith.constant 0 : index
    %64 = vector.load %arg7[%63, %c0_34, %c0_35] : memref<8x2x32xf32, #tpu.memory_space<vmem>>, vector<1x2x32xf32>
    %65 = vector.shape_cast %64 : vector<1x2x32xf32> to vector<2x32xf32>
    %66 = vector.shape_cast %58 : vector<2x32xf32> to vector<1x2x32xf32>
    tpu.vector_store %arg7[%63, %c0_34, %c0_35], %66 {strides = array<i32>} : memref<8x2x32xf32, #tpu.memory_space<vmem>>, vector<1x2x32xf32>,
    %c3_i32 = arith.constant 3 : i32
    %67 = arith.index_cast %c3_i32 : i32 to index
    %c0_36 = arith.constant 0 : index
    %c0_37 = arith.constant 0 : index
    %68 = vector.load %arg0[%67, %c0_36, %c0_37] : memref<8x2x32xf32, #tpu.memory_space<vmem>>, vector<1x2x32xf32>
    %69 = vector.shape_cast %68 : vector<1x2x32xf32> to vector<2x32xf32>
    %cst_38 = arith.constant dense<0.000000e+00> : vector<2x32xf32>
    %70 = tpu.matmul %51, %0, %cst_38 {dimension_numbers = #tpu.dot_dimension_numbers<[1], [0], [0], [1], [0, 0, 1, 1], [], []>} : vector<2x32xf32>, vector<32x32xf32>, vector<2x32xf32> -> vector<2x32xf32>
    %71 = arith.addf %69, %70 : vector<2x32xf32>
    %72 = math.tanh %71 : vector<2x32xf32>
    %73 = tpu.concatenate %72, %58 in 1 : vector<2x32xf32>, vector<2x32xf32> -> vector<2x64xf32>
    %74 = arith.index_cast %c3_i32 : i32 to index
    %c0_39 = arith.constant 0 : index
    %c0_40 = arith.constant 0 : index
    %75 = vector.load %arg1[%74, %c0_39, %c0_40] : memref<8x2x32xf32, #tpu.memory_space<vmem>>, vector<1x2x32xf32>
    %76 = vector.shape_cast %75 : vector<1x2x32xf32> to vector<2x32xf32>
    %cst_41 = arith.constant dense<0.000000e+00> : vector<2x32xf32>
    %77 = tpu.matmul %73, %1, %cst_41 {dimension_numbers = #tpu.dot_dimension_numbers<[1], [0], [0], [1], [0, 0, 1, 1], [], []>} : vector<2x64xf32>, vector<64x32xf32>, vector<2x32xf32> -> vector<2x32xf32>
    %78 = arith.addf %76, %77 : vector<2x32xf32>
    %79 = math.tanh %78 : vector<2x32xf32>
    %80 = arith.index_cast %c3_i32 : i32 to index
    %c0_42 = arith.constant 0 : index
    %c0_43 = arith.constant 0 : index
    %81 = vector.load %arg6[%80, %c0_42, %c0_43] : memref<8x2x32xf32, #tpu.memory_space<vmem>>, vector<1x2x32xf32>
    %82 = vector.shape_cast %81 : vector<1x2x32xf32> to vector<2x32xf32>
    %83 = vector.shape_cast %72 : vector<2x32xf32> to vector<1x2x32xf32>
    tpu.vector_store %arg6[%80, %c0_42, %c0_43], %83 {strides = array<i32>} : memref<8x2x32xf32, #tpu.memory_space<vmem>>, vector<1x2x32xf32>,
    %84 = arith.index_cast %c3_i32 : i32 to index
    %c0_44 = arith.constant 0 : index
    %c0_45 = arith.constant 0 : index
    %85 = vector.load %arg7[%84, %c0_44, %c0_45] : memref<8x2x32xf32, #tpu.memory_space<vmem>>, vector<1x2x32xf32>
    %86 = vector.shape_cast %85 : vector<1x2x32xf32> to vector<2x32xf32>
    %87 = vector.shape_cast %79 : vector<2x32xf32> to vector<1x2x32xf32>
    tpu.vector_store %arg7[%84, %c0_44, %c0_45], %87 {strides = array<i32>} : memref<8x2x32xf32, #tpu.memory_space<vmem>>, vector<1x2x32xf32>,
    %c4_i32 = arith.constant 4 : i32
    %88 = arith.index_cast %c4_i32 : i32 to index
    %c0_46 = arith.constant 0 : index
    %c0_47 = arith.constant 0 : index
    %89 = vector.load %arg0[%88, %c0_46, %c0_47] : memref<8x2x32xf32, #tpu.memory_space<vmem>>, vector<1x2x32xf32>
    %90 = vector.shape_cast %89 : vector<1x2x32xf32> to vector<2x32xf32>
    %cst_48 = arith.constant dense<0.000000e+00> : vector<2x32xf32>
    %91 = tpu.matmul %72, %0, %cst_48 {dimension_numbers = #tpu.dot_dimension_numbers<[1], [0], [0], [1], [0, 0, 1, 1], [], []>} : vector<2x32xf32>, vector<32x32xf32>, vector<2x32xf32> -> vector<2x32xf32>
    %92 = arith.addf %90, %91 : vector<2x32xf32>
    %93 = math.tanh %92 : vector<2x32xf32>
    %94 = tpu.concatenate %93, %79 in 1 : vector<2x32xf32>, vector<2x32xf32> -> vector<2x64xf32>
    %95 = arith.index_cast %c4_i32 : i32 to index
    %c0_49 = arith.constant 0 : index
    %c0_50 = arith.constant 0 : index
    %96 = vector.load %arg1[%95, %c0_49, %c0_50] : memref<8x2x32xf32, #tpu.memory_space<vmem>>, vector<1x2x32xf32>
    %97 = vector.shape_cast %96 : vector<1x2x32xf32> to vector<2x32xf32>
    %cst_51 = arith.constant dense<0.000000e+00> : vector<2x32xf32>
    %98 = tpu.matmul %94, %1, %cst_51 {dimension_numbers = #tpu.dot_dimension_numbers<[1], [0], [0], [1], [0, 0, 1, 1], [], []>} : vector<2x64xf32>, vector<64x32xf32>, vector<2x32xf32> -> vector<2x32xf32>
    %99 = arith.addf %97, %98 : vector<2x32xf32>
    %100 = math.tanh %99 : vector<2x32xf32>
    %101 = arith.index_cast %c4_i32 : i32 to index
    %c0_52 = arith.constant 0 : index
    %c0_53 = arith.constant 0 : index
    %102 = vector.load %arg6[%101, %c0_52, %c0_53] : memref<8x2x32xf32, #tpu.memory_space<vmem>>, vector<1x2x32xf32>
    %103 = vector.shape_cast %102 : vector<1x2x32xf32> to vector<2x32xf32>
    %104 = vector.shape_cast %93 : vector<2x32xf32> to vector<1x2x32xf32>
    tpu.vector_store %arg6[%101, %c0_52, %c0_53], %104 {strides = array<i32>} : memref<8x2x32xf32, #tpu.memory_space<vmem>>, vector<1x2x32xf32>,
    %105 = arith.index_cast %c4_i32 : i32 to index
    %c0_54 = arith.constant 0 : index
    %c0_55 = arith.constant 0 : index
    %106 = vector.load %arg7[%105, %c0_54, %c0_55] : memref<8x2x32xf32, #tpu.memory_space<vmem>>, vector<1x2x32xf32>
    %107 = vector.shape_cast %106 : vector<1x2x32xf32> to vector<2x32xf32>
    %108 = vector.shape_cast %100 : vector<2x32xf32> to vector<1x2x32xf32>
    tpu.vector_store %arg7[%105, %c0_54, %c0_55], %108 {strides = array<i32>} : memref<8x2x32xf32, #tpu.memory_space<vmem>>, vector<1x2x32xf32>,
    %c5_i32 = arith.constant 5 : i32
    %109 = arith.index_cast %c5_i32 : i32 to index
    %c0_56 = arith.constant 0 : index
    %c0_57 = arith.constant 0 : index
    %110 = vector.load %arg0[%109, %c0_56, %c0_57] : memref<8x2x32xf32, #tpu.memory_space<vmem>>, vector<1x2x32xf32>
    %111 = vector.shape_cast %110 : vector<1x2x32xf32> to vector<2x32xf32>
    %cst_58 = arith.constant dense<0.000000e+00> : vector<2x32xf32>
    %112 = tpu.matmul %93, %0, %cst_58 {dimension_numbers = #tpu.dot_dimension_numbers<[1], [0], [0], [1], [0, 0, 1, 1], [], []>} : vector<2x32xf32>, vector<32x32xf32>, vector<2x32xf32> -> vector<2x32xf32>
    %113 = arith.addf %111, %112 : vector<2x32xf32>
    %114 = math.tanh %113 : vector<2x32xf32>
    %115 = tpu.concatenate %114, %100 in 1 : vector<2x32xf32>, vector<2x32xf32> -> vector<2x64xf32>
    %116 = arith.index_cast %c5_i32 : i32 to index
    %c0_59 = arith.constant 0 : index
    %c0_60 = arith.constant 0 : index
    %117 = vector.load %arg1[%116, %c0_59, %c0_60] : memref<8x2x32xf32, #tpu.memory_space<vmem>>, vector<1x2x32xf32>
    %118 = vector.shape_cast %117 : vector<1x2x32xf32> to vector<2x32xf32>
    %cst_61 = arith.constant dense<0.000000e+00> : vector<2x32xf32>
    %119 = tpu.matmul %115, %1, %cst_61 {dimension_numbers = #tpu.dot_dimension_numbers<[1], [0], [0], [1], [0, 0, 1, 1], [], []>} : vector<2x64xf32>, vector<64x32xf32>, vector<2x32xf32> -> vector<2x32xf32>
    %120 = arith.addf %118, %119 : vector<2x32xf32>
    %121 = math.tanh %120 : vector<2x32xf32>
    %122 = arith.index_cast %c5_i32 : i32 to index
    %c0_62 = arith.constant 0 : index
    %c0_63 = arith.constant 0 : index
    %123 = vector.load %arg6[%122, %c0_62, %c0_63] : memref<8x2x32xf32, #tpu.memory_space<vmem>>, vector<1x2x32xf32>
    %124 = vector.shape_cast %123 : vector<1x2x32xf32> to vector<2x32xf32>
    %125 = vector.shape_cast %114 : vector<2x32xf32> to vector<1x2x32xf32>
    tpu.vector_store %arg6[%122, %c0_62, %c0_63], %125 {strides = array<i32>} : memref<8x2x32xf32, #tpu.memory_space<vmem>>, vector<1x2x32xf32>,
    %126 = arith.index_cast %c5_i32 : i32 to index
    %c0_64 = arith.constant 0 : index
    %c0_65 = arith.constant 0 : index
    %127 = vector.load %arg7[%126, %c0_64, %c0_65] : memref<8x2x32xf32, #tpu.memory_space<vmem>>, vector<1x2x32xf32>
    %128 = vector.shape_cast %127 : vector<1x2x32xf32> to vector<2x32xf32>
    %129 = vector.shape_cast %121 : vector<2x32xf32> to vector<1x2x32xf32>
    tpu.vector_store %arg7[%126, %c0_64, %c0_65], %129 {strides = array<i32>} : memref<8x2x32xf32, #tpu.memory_space<vmem>>, vector<1x2x32xf32>,
    %c6_i32 = arith.constant 6 : i32
    %130 = arith.index_cast %c6_i32 : i32 to index
    %c0_66 = arith.constant 0 : index
    %c0_67 = arith.constant 0 : index
    %131 = vector.load %arg0[%130, %c0_66, %c0_67] : memref<8x2x32xf32, #tpu.memory_space<vmem>>, vector<1x2x32xf32>
    %132 = vector.shape_cast %131 : vector<1x2x32xf32> to vector<2x32xf32>
    %cst_68 = arith.constant dense<0.000000e+00> : vector<2x32xf32>
    %133 = tpu.matmul %114, %0, %cst_68 {dimension_numbers = #tpu.dot_dimension_numbers<[1], [0], [0], [1], [0, 0, 1, 1], [], []>} : vector<2x32xf32>, vector<32x32xf32>, vector<2x32xf32> -> vector<2x32xf32>
    %134 = arith.addf %132, %133 : vector<2x32xf32>
    %135 = math.tanh %134 : vector<2x32xf32>
    %136 = tpu.concatenate %135, %121 in 1 : vector<2x32xf32>, vector<2x32xf32> -> vector<2x64xf32>
    %137 = arith.index_cast %c6_i32 : i32 to index
    %c0_69 = arith.constant 0 : index
    %c0_70 = arith.constant 0 : index
    %138 = vector.load %arg1[%137, %c0_69, %c0_70] : memref<8x2x32xf32, #tpu.memory_space<vmem>>, vector<1x2x32xf32>
    %139 = vector.shape_cast %138 : vector<1x2x32xf32> to vector<2x32xf32>
    %cst_71 = arith.constant dense<0.000000e+00> : vector<2x32xf32>
    %140 = tpu.matmul %136, %1, %cst_71 {dimension_numbers = #tpu.dot_dimension_numbers<[1], [0], [0], [1], [0, 0, 1, 1], [], []>} : vector<2x64xf32>, vector<64x32xf32>, vector<2x32xf32> -> vector<2x32xf32>
    %141 = arith.addf %139, %140 : vector<2x32xf32>
    %142 = math.tanh %141 : vector<2x32xf32>
    %143 = arith.index_cast %c6_i32 : i32 to index
    %c0_72 = arith.constant 0 : index
    %c0_73 = arith.constant 0 : index
    %144 = vector.load %arg6[%143, %c0_72, %c0_73] : memref<8x2x32xf32, #tpu.memory_space<vmem>>, vector<1x2x32xf32>
    %145 = vector.shape_cast %144 : vector<1x2x32xf32> to vector<2x32xf32>
    %146 = vector.shape_cast %135 : vector<2x32xf32> to vector<1x2x32xf32>
    tpu.vector_store %arg6[%143, %c0_72, %c0_73], %146 {strides = array<i32>} : memref<8x2x32xf32, #tpu.memory_space<vmem>>, vector<1x2x32xf32>,
    %147 = arith.index_cast %c6_i32 : i32 to index
    %c0_74 = arith.constant 0 : index
    %c0_75 = arith.constant 0 : index
    %148 = vector.load %arg7[%147, %c0_74, %c0_75] : memref<8x2x32xf32, #tpu.memory_space<vmem>>, vector<1x2x32xf32>
    %149 = vector.shape_cast %148 : vector<1x2x32xf32> to vector<2x32xf32>
    %150 = vector.shape_cast %142 : vector<2x32xf32> to vector<1x2x32xf32>
    tpu.vector_store %arg7[%147, %c0_74, %c0_75], %150 {strides = array<i32>} : memref<8x2x32xf32, #tpu.memory_space<vmem>>, vector<1x2x32xf32>,
    %c7_i32 = arith.constant 7 : i32
    %151 = arith.index_cast %c7_i32 : i32 to index
    %c0_76 = arith.constant 0 : index
    %c0_77 = arith.constant 0 : index
    %152 = vector.load %arg0[%151, %c0_76, %c0_77] : memref<8x2x32xf32, #tpu.memory_space<vmem>>, vector<1x2x32xf32>
    %153 = vector.shape_cast %152 : vector<1x2x32xf32> to vector<2x32xf32>
    %cst_78 = arith.constant dense<0.000000e+00> : vector<2x32xf32>
    %154 = tpu.matmul %135, %0, %cst_78 {dimension_numbers = #tpu.dot_dimension_numbers<[1], [0], [0], [1], [0, 0, 1, 1], [], []>} : vector<2x32xf32>, vector<32x32xf32>, vector<2x32xf32> -> vector<2x32xf32>
    %155 = arith.addf %153, %154 : vector<2x32xf32>
    %156 = math.tanh %155 : vector<2x32xf32>
    %157 = tpu.concatenate %156, %142 in 1 : vector<2x32xf32>, vector<2x32xf32> -> vector<2x64xf32>
    %158 = arith.index_cast %c7_i32 : i32 to index
    %c0_79 = arith.constant 0 : index
    %c0_80 = arith.constant 0 : index
    %159 = vector.load %arg1[%158, %c0_79, %c0_80] : memref<8x2x32xf32, #tpu.memory_space<vmem>>, vector<1x2x32xf32>
    %160 = vector.shape_cast %159 : vector<1x2x32xf32> to vector<2x32xf32>
    %cst_81 = arith.constant dense<0.000000e+00> : vector<2x32xf32>
    %161 = tpu.matmul %157, %1, %cst_81 {dimension_numbers = #tpu.dot_dimension_numbers<[1], [0], [0], [1], [0, 0, 1, 1], [], []>} : vector<2x64xf32>, vector<64x32xf32>, vector<2x32xf32> -> vector<2x32xf32>
    %162 = arith.addf %160, %161 : vector<2x32xf32>
    %163 = math.tanh %162 : vector<2x32xf32>
    %164 = arith.index_cast %c7_i32 : i32 to index
    %c0_82 = arith.constant 0 : index
    %c0_83 = arith.constant 0 : index
    %165 = vector.load %arg6[%164, %c0_82, %c0_83] : memref<8x2x32xf32, #tpu.memory_space<vmem>>, vector<1x2x32xf32>
    %166 = vector.shape_cast %165 : vector<1x2x32xf32> to vector<2x32xf32>
    %167 = vector.shape_cast %156 : vector<2x32xf32> to vector<1x2x32xf32>
    tpu.vector_store %arg6[%164, %c0_82, %c0_83], %167 {strides = array<i32>} : memref<8x2x32xf32, #tpu.memory_space<vmem>>, vector<1x2x32xf32>,
    %168 = arith.index_cast %c7_i32 : i32 to index
    %c0_84 = arith.constant 0 : index
    %c0_85 = arith.constant 0 : index
    %169 = vector.load %arg7[%168, %c0_84, %c0_85] : memref<8x2x32xf32, #tpu.memory_space<vmem>>, vector<1x2x32xf32>
    %170 = vector.shape_cast %169 : vector<1x2x32xf32> to vector<2x32xf32>
    %171 = vector.shape_cast %163 : vector<2x32xf32> to vector<1x2x32xf32>
    tpu.vector_store %arg7[%168, %c0_84, %c0_85], %171 {strides = array<i32>} : memref<8x2x32xf32, #tpu.memory_space<vmem>>, vector<1x2x32xf32>,
    %c8_i32 = arith.constant 8 : i32
    return
  }
}

</mosaic_0001>

<bundles_post_ra>
// kernel: tpu_custom_call.1
= control target key start
LH: loop header
LB: loop body
LE: loop exit
PB: predicated region body
PF: predicated region fallthrough
CT: control target
= control target key end

     0   :  { %13 = vsyncpa [#allocation3], 0  ;;  %v1989_v3 = vmov 0.0|0.0   ;;  %vm1990_vm0 = vmmov 0   ;;  %v1991_v6 = vmov 0.0   ;;  %s2342_s0 = inlined_call_operand.vmem [shape: f32[8,2,32], index: 0, kind: input, shape index: {}]   ;;  %s2343_s1 = inlined_call_operand.vmem [shape: f32[8,2,32], index: 1, kind: input, shape index: {}]   ;;  %s2344_s2 = inlined_call_operand.vmem [shape: f32[2,32], index: 2, kind: input, shape index: {}]   ;;  %s2345_s3 = inlined_call_operand.vmem [shape: f32[2,32], index: 3, kind: input, shape index: {}]   ;;  %s2346_s4 = inlined_call_operand.vmem [shape: f32[32,32], index: 4, kind: input, shape index: {}]   ;;  %s2347_s5 = inlined_call_operand.vmem [shape: f32[64,32], index: 5, kind: input, shape index: {}]   ;;  %s2348_s6 = inlined_call_operand.hbm [shape: f32[8,2,32], index: 6, kind: output, shape index: {0}]   ;;  %s2349_s7 = inlined_call_operand.hbm [shape: f32[8,2,32], index: 7, kind: output, shape index: {1}]  }
   0x1   :  { %v27_v0 = vld [vmem:[%s2346_s4] sm:$0xff]  ;;  %v28_v1 = vld [vmem:[%s2346_s4 + $0x8] sm:$0xff]  ;;  %v29_v2 = vld [vmem:[%s2346_s4 + $0x10] sm:$0xff]  ;;  %1758 = vmatprep.subr.bf16.mxu1 %v1989_v3  ;;  %1526 = vmatprep.mubr.msk.f32.mxu1 %vm1990_vm0, %v1991_v6 }
   0x2   :  { %v2046_v4 = vpack.c.bf16 %v28_v1, %v27_v0  ;;  %v30_v5 = vld [vmem:[%s2346_s4 + $0x18] sm:$0xff]  ;;  %v40_v7 = vld [vmem:[%s2345_s3] sm:$0x3]  ;;  %1776 = vmatprep.subr.bf16.mxu0 %v1989_v3  ;;  %1556 = vmatprep.mubr.msk.f32.mxu0 %vm1990_vm0, %v1991_v6 }
   0x3   :  { %14 = vsyncpa [#allocation5], 0  ;;  %v2060_v8 = vpack.c.bf16 %v30_v5, %v29_v2  ;;  %s1992_s4 = smov 32   ;;  %v39_v9 = vld [vmem:[%s2344_s2] sm:$0x3]  ;;  %vm42_vm1 = vcmask 261120  }
   0x4   :  { %1760 = vmatpush3.bf16.msra.mxu1 %v2046_v4  ;;  %119 = vrot.lane.b32.xlu0 %v40_v7, %s1992_s4  ;;  %v31_v10 = vld [vmem:[%s2347_s5] sm:$0xff]  ;;  %v32_v11 = vld [vmem:[%s2347_s5 + $0x8] sm:$0xff]  ;;  %v33_v13 = vld [vmem:[%s2347_s5 + $0x10] sm:$0xff]  ;;  %vm200_vm2 = vcmask 254976   ;;  %vm124_vm3 = vcmask 523264  }
   0x5   :  { %1761 = vmatprep.subr.bf16.mxu1 %v1989_v3  ;;  %1778 = vmatpush3.bf16.msra.mxu0 %v2046_v4  ;;  %v2082_v12 = vpack.c.bf16 %v32_v11, %v31_v10  ;;  %v34_v14 = vld [vmem:[%s2347_s5 + $0x18] sm:$0xff]  ;;  %v35_v16 = vld [vmem:[%s2347_s5 + $0x20] sm:$0xff]  ;;  %v36_v17 = vld [vmem:[%s2347_s5 + $0x28] sm:$0xff] }
   0x6   :  { %1779 = vmatprep.subr.bf16.mxu0 %v1989_v3  ;;  %v2092_v15 = vpack.c.bf16 %v34_v14, %v33_v13  ;;  %v2102_v18 = vpack.c.bf16 %v36_v17, %v35_v16  ;;  %v37_v19 = vld [vmem:[%s2347_s5 + $0x30] sm:$0xff]  ;;  %v38_v20 = vld [vmem:[%s2347_s5 + $0x38] sm:$0xff]  ;;  %v41_v22 = vld [vmem:[%s2342_s0] sm:$0x3] }
   0x7   :  { %v2112_v21 = vpack.c.bf16 %v38_v20, %v37_v19  ;;  %v1378_v29 = vld [vmem:[%s2342_s0 + $0x2] sm:$0x3]  ;;  %v123_v30 = vld [vmem:[%s2343_s1] sm:$0x3]  ;;  %v1382_v41 = vld [vmem:[%s2342_s0 + $0x4] sm:$0x3] }
   0x8   :  { %1763 = vmatpush3.bf16.msra.mxu1 %v2060_v8  ;;  %v1380_v46 = vld [vmem:[%s2343_s1 + $0x2] sm:$0x3]  ;;  %v1386_v51 = vld [vmem:[%s2342_s0 + $0x6] sm:$0x3]  ;;  %v1384_v58 = vld [vmem:[%s2343_s1 + $0x4] sm:$0x3] }
   0x9   :  { %1764 = vmatprep.subr.bf16.mxu1 %v1989_v3  ;;  %1781 = vmatpush3.bf16.msra.mxu0 %v2060_v8  ;;  %v1390_v62 = vld [vmem:[%s2342_s0 + $0x8] sm:$0x3]  ;;  %v1388_v10 = vld [vmem:[%s2343_s1 + $0x6] sm:$0x3]  ;;  %v1394_v16 = vld [vmem:[%s2342_s0 + $0xa] sm:$0x3] }
   0xa   :  { %1782 = vmatprep.subr.bf16.mxu0 %v1989_v3 }
   0xb   :  { %1527 = vmatmul.mubr.msk.f32.vlgmr.msra.gmra.mrb[0].mxu1 %vm42_vm1, %v39_v9 }
   0xc   :  { %1545 = vmatprep.mubr.msk.f32.mxu1 %vm1990_vm0, %v1991_v6  ;;  %1766 = vmatpush3.bf16.msra.mxu1 %v2082_v12 }
   0xd   :  { %1767 = vmatprep.subr.bf16.mxu1 %v1989_v3 }
  0x10   :  { %1769 = vmatpush3.bf16.msra.mxu1 %v2092_v15 }
  0x11   :  { %1770 = vmatprep.subr.bf16.mxu1 %v1989_v3 }
  0x14   :  { %1772 = vmatpush3.bf16.msra.mxu1 %v2102_v18 }
  0x15   :  { %1773 = vmatprep.subr.bf16.mxu1 %v1989_v3 }
  0x18   :  { %1775 = vmatpush3.bf16.msra.mxu1 %v2112_v21 }
  0x19   :  { %1794 = vmatprep.subr.bf16.mxu1 %v1989_v3 }
  0x76   :  { %v120_v26 = vpop.permute.xlu0 %119 }
  0xde   :  { %v112_v23 = vpop.f32.mrb[0].mxu1 }
  0xdf   :  { %v116_v24 = vadd.f32 %v112_v23, %v41_v22  ;;  %v1528_v25 = vpop.f32.mrb[1].mxu1 }
  0xe1   :  { %1909 = vtanh.f32 %v116_v24 }
  0xeb   :  { %v1910_v27 = vpop.eup %1909 }
  0xec   :  { %201 = vst.msk [vmem:[#allocation2] sm:$0x3] %vm200_vm2, %v1910_v27  ;;  %v122_v28 = vsel %vm42_vm1, %v1910_v27, %v120_v26  ;;  %1557 = vmatmul.mubr.msk.f32.vlgmr.msra.gmra.mrb[0].mxu0 %vm42_vm1, %v1910_v27  ;;  %v1392_v26 = vld [vmem:[%s2343_s1 + $0x8] sm:$0x3] }
  0xed   :  { %1546 = vmatmul.mubr.msk.f32.vlgmr.msra.gmra.mrb[2].mxu1 %vm124_vm3, %v122_v28  ;;  %1784 = vmatpush3.bf16.msra.mxu0 %v2082_v12 }
  0xee   :  { %1796 = vmatpush3.bf16.msra.mxu1 %v2046_v4  ;;  %1586 = vmatprep.mubr.msk.f32.mxu1 %vm1990_vm0, %v1991_v6 }
  0xef   :  { %1797 = vmatprep.subr.bf16.mxu1 %v1989_v3  ;;  %1785 = vmatprep.subr.bf16.mxu0 %v1989_v3 }
  0xf0   :  { %1575 = vmatprep.mubr.msk.f32.mxu0 %vm1990_vm0, %v1991_v6 }
  0xf1   :  { %1787 = vmatpush3.bf16.msra.mxu0 %v2092_v15 }
  0xf2   :  { %1799 = vmatpush3.bf16.msra.mxu1 %v2060_v8  ;;  %1788 = vmatprep.subr.bf16.mxu0 %v1989_v3 }
  0xf3   :  { %1800 = vmatprep.subr.bf16.mxu1 %v1989_v3 }
  0xf5   :  { %1790 = vmatpush3.bf16.msra.mxu0 %v2102_v18 }
  0xf6   :  { %1791 = vmatprep.subr.bf16.mxu0 %v1989_v3 }
  0xf9   :  { %1793 = vmatpush3.bf16.msra.mxu0 %v2112_v21 }
  0xfa   :  { %1812 = vmatprep.subr.bf16.mxu0 %v1989_v3 }
 0x1bf   :  { %v274_v31 = vpop.f32.mrb[0].mxu0 }
 0x1c0   :  { %v278_v32 = vadd.f32 %v1378_v29, %v274_v31  ;;  %v194_v33 = vpop.f32.mrb[2].mxu1  ;;  %v1558_v34 = vpop.f32.mrb[1].mxu0 }
 0x1c1   :  { %v198_v35 = vadd.f32 %v194_v33, %v123_v30  ;;  %v1547_v36 = vpop.f32.mrb[3].mxu1  ;;  %v1398_v30 = vld [vmem:[%s2342_s0 + $0xc] sm:$0x3] }
 0x1c2   :  { %1911 = vtanh.f32 %v278_v32 }
 0x1c3   :  { %1913 = vtanh.f32 %v198_v35 }
 0x1cc   :  { %v1912_v37 = vpop.eup %1911 }
 0x1cd   :  { %v1914_v38 = vpop.eup %1913  ;;  %363 = vst.msk [vmem:[#allocation2 + $0x2] sm:$0x3] %vm200_vm2, %v1912_v37  ;;  %1587 = vmatmul.mubr.msk.f32.vlgmr.msra.gmra.mrb[4].mxu1 %vm42_vm1, %v1912_v37 }
 0x1ce   :  { %202 = vst.msk [vmem:[#allocation4] sm:$0x3] %vm200_vm2, %v1914_v38  ;;  %281 = vrot.lane.b32.xlu0 %v1914_v38, %s1992_s4  ;;  %1802 = vmatpush3.bf16.msra.mxu1 %v2082_v12 }
 0x1cf   :  { %1803 = vmatprep.subr.bf16.mxu1 %v1989_v3  ;;  %1605 = vmatprep.mubr.msk.f32.mxu1 %vm1990_vm0, %v1991_v6 }
 0x1d2   :  { %1805 = vmatpush3.bf16.msra.mxu1 %v2092_v15 }
 0x1d3   :  { %1806 = vmatprep.subr.bf16.mxu1 %v1989_v3 }
 0x1d6   :  { %1808 = vmatpush3.bf16.msra.mxu1 %v2102_v18 }
 0x1d7   :  { %1809 = vmatprep.subr.bf16.mxu1 %v1989_v3 }
 0x1da   :  { %1811 = vmatpush3.bf16.msra.mxu1 %v2112_v21 }
 0x1db   :  { %1830 = vmatprep.subr.bf16.mxu1 %v1989_v3 }
 0x240   :  { %v282_v39 = vpop.permute.xlu0 %281 }
 0x241   :  { %v284_v40 = vsel %vm42_vm1, %v1912_v37, %v282_v39 }
 0x242   :  { %1576 = vmatmul.mubr.msk.f32.vlgmr.msra.gmra.mrb[2].mxu0 %vm124_vm3, %v284_v40 }
 0x243   :  { %1814 = vmatpush3.bf16.msra.mxu0 %v2046_v4  ;;  %1616 = vmatprep.mubr.msk.f32.mxu0 %vm1990_vm0, %v1991_v6 }
 0x244   :  { %1815 = vmatprep.subr.bf16.mxu0 %v1989_v3 }
 0x247   :  { %1817 = vmatpush3.bf16.msra.mxu0 %v2060_v8 }
 0x248   :  { %1818 = vmatprep.subr.bf16.mxu0 %v1989_v3 }
 0x2a0   :  { %v437_v42 = vpop.f32.mrb[4].mxu1 }
 0x2a1   :  { %v441_v43 = vadd.f32 %v1382_v41, %v437_v42  ;;  %v1588_v44 = vpop.f32.mrb[5].mxu1  ;;  %v1400_v42 = vld [vmem:[%s2343_s1 + $0xc] sm:$0x3] }
 0x2a3   :  { %1915 = vtanh.f32 %v441_v43 }
 0x2ad   :  { %v1916_v45 = vpop.eup %1915 }
 0x2ae   :  { %526 = vst.msk [vmem:[#allocation2 + $0x4] sm:$0x3] %vm200_vm2, %v1916_v45  ;;  %1617 = vmatmul.mubr.msk.f32.vlgmr.msra.gmra.mrb[4].mxu0 %vm42_vm1, %v1916_v45 }
 0x2af   :  { %1820 = vmatpush3.bf16.msra.mxu0 %v2082_v12  ;;  %1635 = vmatprep.mubr.msk.f32.mxu0 %vm1990_vm0, %v1991_v6 }
 0x2b0   :  { %1821 = vmatprep.subr.bf16.mxu0 %v1989_v3 }
 0x2b3   :  { %1823 = vmatpush3.bf16.msra.mxu0 %v2092_v15 }
 0x2b4   :  { %1824 = vmatprep.subr.bf16.mxu0 %v1989_v3 }
 0x2b7   :  { %1826 = vmatpush3.bf16.msra.mxu0 %v2102_v18 }
 0x2b8   :  { %1827 = vmatprep.subr.bf16.mxu0 %v1989_v3 }
 0x2bb   :  { %1829 = vmatpush3.bf16.msra.mxu0 %v2112_v21 }
 0x2bc   :  { %1848 = vmatprep.subr.bf16.mxu0 %v1989_v3 }
 0x315   :  { %v356_v47 = vpop.f32.mrb[2].mxu0 }
 0x316   :  { %v360_v48 = vadd.f32 %v1380_v46, %v356_v47  ;;  %v1577_v49 = vpop.f32.mrb[3].mxu0 }
 0x318   :  { %1917 = vtanh.f32 %v360_v48 }
 0x322   :  { %v1918_v50 = vpop.eup %1917 }
 0x323   :  { %365 = vst.msk [vmem:[#allocation4 + $0x2] sm:$0x3] %vm200_vm2, %v1918_v50  ;;  %444 = vrot.lane.b32.xlu1 %v1918_v50, %s1992_s4 }
 0x381   :  { %v600_v52 = vpop.f32.mrb[4].mxu0 }
 0x382   :  { %v604_v53 = vadd.f32 %v1386_v51, %v600_v52  ;;  %v1618_v54 = vpop.f32.mrb[5].mxu0 }
 0x384   :  { %1919 = vtanh.f32 %v604_v53 }
 0x38e   :  { %v1920_v55 = vpop.eup %1919 }
 0x38f   :  { %689 = vst.msk [vmem:[#allocation2 + $0x6] sm:$0x3] %vm200_vm2, %v1920_v55 }
 0x395   :  { %v445_v56 = vpop.permute.xlu1 %444 }
 0x396   :  { %v447_v57 = vsel %vm42_vm1, %v1916_v45, %v445_v56 }
 0x397   :  { %1606 = vmatmul.mubr.msk.f32.vlgmr.msra.gmra.mrb[6].mxu1 %vm124_vm3, %v447_v57 }
 0x398   :  { %1832 = vmatpush3.bf16.msra.mxu1 %v2046_v4  ;;  %1646 = vmatprep.mubr.msk.f32.mxu1 %vm1990_vm0, %v1991_v6 }
 0x399   :  { %1833 = vmatprep.subr.bf16.mxu1 %v1989_v3 }
 0x39c   :  { %1835 = vmatpush3.bf16.msra.mxu1 %v2060_v8 }
 0x39d   :  { %1836 = vmatprep.subr.bf16.mxu1 %v1989_v3 }
 0x39f   :  { %1647 = vmatmul.mubr.msk.f32.vlgmr.msra.gmra.mrb[8].mxu1 %vm42_vm1, %v1920_v55 }
 0x3a0   :  { %1838 = vmatpush3.bf16.msra.mxu1 %v2082_v12  ;;  %1665 = vmatprep.mubr.msk.f32.mxu1 %vm1990_vm0, %v1991_v6 }
 0x3a1   :  { %1839 = vmatprep.subr.bf16.mxu1 %v1989_v3 }
 0x3a4   :  { %1841 = vmatpush3.bf16.msra.mxu1 %v2092_v15 }
 0x3a5   :  { %1842 = vmatprep.subr.bf16.mxu1 %v1989_v3 }
 0x3a8   :  { %1844 = vmatpush3.bf16.msra.mxu1 %v2102_v18 }
 0x3a9   :  { %1845 = vmatprep.subr.bf16.mxu1 %v1989_v3 }
 0x3ac   :  { %1847 = vmatpush3.bf16.msra.mxu1 %v2112_v21 }
 0x3ad   :  { %1866 = vmatprep.subr.bf16.mxu1 %v1989_v3 }
 0x46a   :  { %v519_v59 = vpop.f32.mrb[6].mxu1 }
 0x46b   :  { %v523_v60 = vadd.f32 %v1384_v58, %v519_v59  ;;  %v1607_v61 = vpop.f32.mrb[7].mxu1 }
 0x46d   :  { %1921 = vtanh.f32 %v523_v60 }
 0x472   :  { %v763_v63 = vpop.f32.mrb[8].mxu1 }
 0x473   :  { %v767_v0 = vadd.f32 %v1390_v62, %v763_v63  ;;  %v1648_v1 = vpop.f32.mrb[9].mxu1 }
 0x475   :  { %1923 = vtanh.f32 %v767_v0 }
 0x477   :  { %v1922_v2 = vpop.eup %1921 }
 0x478   :  { %528 = vst.msk [vmem:[#allocation4 + $0x4] sm:$0x3] %vm200_vm2, %v1922_v2  ;;  %607 = vrot.lane.b32.xlu1 %v1922_v2, %s1992_s4 }
 0x47f   :  { %v1924_v5 = vpop.eup %1923 }
 0x480   :  { %852 = vst.msk [vmem:[#allocation2 + $0x8] sm:$0x3] %vm200_vm2, %v1924_v5 }
 0x4ea   :  { %v608_v7 = vpop.permute.xlu1 %607 }
 0x4eb   :  { %v610_v9 = vsel %vm42_vm1, %v1920_v55, %v608_v7 }
 0x4ec   :  { %1636 = vmatmul.mubr.msk.f32.vlgmr.msra.gmra.mrb[6].mxu0 %vm124_vm3, %v610_v9 }
 0x4ed   :  { %1850 = vmatpush3.bf16.msra.mxu0 %v2046_v4  ;;  %1676 = vmatprep.mubr.msk.f32.mxu0 %vm1990_vm0, %v1991_v6 }
 0x4ee   :  { %1851 = vmatprep.subr.bf16.mxu0 %v1989_v3 }
 0x4f1   :  { %1853 = vmatpush3.bf16.msra.mxu0 %v2060_v8 }
 0x4f2   :  { %1854 = vmatprep.subr.bf16.mxu0 %v1989_v3 }
 0x4f4   :  { %1677 = vmatmul.mubr.msk.f32.vlgmr.msra.gmra.mrb[8].mxu0 %vm42_vm1, %v1924_v5 }
 0x4f5   :  { %1856 = vmatpush3.bf16.msra.mxu0 %v2082_v12  ;;  %1695 = vmatprep.mubr.msk.f32.mxu0 %vm1990_vm0, %v1991_v6 }
 0x4f6   :  { %1857 = vmatprep.subr.bf16.mxu0 %v1989_v3 }
 0x4f9   :  { %1859 = vmatpush3.bf16.msra.mxu0 %v2092_v15 }
 0x4fa   :  { %1860 = vmatprep.subr.bf16.mxu0 %v1989_v3 }
 0x4fd   :  { %1862 = vmatpush3.bf16.msra.mxu0 %v2102_v18 }
 0x4fe   :  { %1863 = vmatprep.subr.bf16.mxu0 %v1989_v3 }
 0x501   :  { %1865 = vmatpush3.bf16.msra.mxu0 %v2112_v21 }
 0x502   :  { %1884 = vmatprep.subr.bf16.mxu0 %v1989_v3 }
 0x5bf   :  { %v682_v11 = vpop.f32.mrb[6].mxu0 }
 0x5c0   :  { %v686_v13 = vadd.f32 %v1388_v10, %v682_v11  ;;  %v1637_v14 = vpop.f32.mrb[7].mxu0 }
 0x5c2   :  { %1925 = vtanh.f32 %v686_v13 }
 0x5c7   :  { %v926_v17 = vpop.f32.mrb[8].mxu0 }
 0x5c8   :  { %v930_v19 = vadd.f32 %v1394_v16, %v926_v17  ;;  %v1678_v20 = vpop.f32.mrb[9].mxu0 }
 0x5ca   :  { %1927 = vtanh.f32 %v930_v19 }
 0x5cc   :  { %v1926_v22 = vpop.eup %1925 }
 0x5cd   :  { %691 = vst.msk [vmem:[#allocation4 + $0x6] sm:$0x3] %vm200_vm2, %v1926_v22  ;;  %770 = vrot.lane.b32.xlu0 %v1926_v22, %s1992_s4 }
 0x5d4   :  { %v1928_v23 = vpop.eup %1927 }
 0x5d5   :  { %1015 = vst.msk [vmem:[#allocation2 + $0xa] sm:$0x3] %vm200_vm2, %v1928_v23 }
 0x63f   :  { %v771_v24 = vpop.permute.xlu0 %770 }
 0x640   :  { %v773_v25 = vsel %vm42_vm1, %v1924_v5, %v771_v24 }
 0x641   :  { %1666 = vmatmul.mubr.msk.f32.vlgmr.msra.gmra.mrb[10].mxu1 %vm124_vm3, %v773_v25 }
 0x642   :  { %1868 = vmatpush3.bf16.msra.mxu1 %v2046_v4  ;;  %1706 = vmatprep.mubr.msk.f32.mxu1 %vm1990_vm0, %v1991_v6 }
 0x643   :  { %1869 = vmatprep.subr.bf16.mxu1 %v1989_v3 }
 0x646   :  { %1871 = vmatpush3.bf16.msra.mxu1 %v2060_v8 }
 0x647   :  { %1872 = vmatprep.subr.bf16.mxu1 %v1989_v3 }
 0x649   :  { %1707 = vmatmul.mubr.msk.f32.vlgmr.msra.gmra.mrb[12].mxu1 %vm42_vm1, %v1928_v23 }
 0x64a   :  { %1874 = vmatpush3.bf16.msra.mxu1 %v2082_v12  ;;  %1725 = vmatprep.mubr.msk.f32.mxu1 %vm1990_vm0, %v1991_v6 }
 0x64b   :  { %1875 = vmatprep.subr.bf16.mxu1 %v1989_v3 }
 0x64e   :  { %1877 = vmatpush3.bf16.msra.mxu1 %v2092_v15 }
 0x64f   :  { %1878 = vmatprep.subr.bf16.mxu1 %v1989_v3 }
 0x652   :  { %1880 = vmatpush3.bf16.msra.mxu1 %v2102_v18 }
 0x653   :  { %1881 = vmatprep.subr.bf16.mxu1 %v1989_v3 }
 0x656   :  { %1883 = vmatpush3.bf16.msra.mxu1 %v2112_v21 }
 0x714   :  { %v845_v27 = vpop.f32.mrb[10].mxu1 }
 0x715   :  { %v849_v28 = vadd.f32 %v1392_v26, %v845_v27  ;;  %v1667_v29 = vpop.f32.mrb[11].mxu1 }
 0x717   :  { %1929 = vtanh.f32 %v849_v28 }
 0x71c   :  { %v1089_v31 = vpop.f32.mrb[12].mxu1 }
 0x71d   :  { %v1093_v32 = vadd.f32 %v1398_v30, %v1089_v31  ;;  %v1708_v33 = vpop.f32.mrb[13].mxu1 }
 0x71f   :  { %1931 = vtanh.f32 %v1093_v32 }
 0x721   :  { %v1930_v34 = vpop.eup %1929 }
 0x722   :  { %854 = vst.msk [vmem:[#allocation4 + $0x8] sm:$0x3] %vm200_vm2, %v1930_v34  ;;  %933 = vrot.lane.b32.xlu1 %v1930_v34, %s1992_s4 }
 0x729   :  { %v1932_v35 = vpop.eup %1931 }
 0x72a   :  { %1178 = vst.msk [vmem:[#allocation2 + $0xc] sm:$0x3] %vm200_vm2, %v1932_v35 }
 0x794   :  { %v934_v36 = vpop.permute.xlu1 %933 }
 0x795   :  { %v936_v37 = vsel %vm42_vm1, %v1928_v23, %v934_v36 }
 0x796   :  { %1696 = vmatmul.mubr.msk.f32.vlgmr.msra.gmra.mrb[10].mxu0 %vm124_vm3, %v936_v37 }
 0x797   :  { %1886 = vmatpush3.bf16.msra.mxu0 %v2046_v4  ;;  %1736 = vmatprep.mubr.msk.f32.mxu0 %vm1990_vm0, %v1991_v6  ;;  %v1396_v4 = vld [vmem:[%s2343_s1 + $0xa] sm:$0x3] }
 0x798   :  { %1887 = vmatprep.subr.bf16.mxu0 %v1989_v3 }
 0x79b   :  { %1889 = vmatpush3.bf16.msra.mxu0 %v2060_v8 }
 0x79c   :  { %1890 = vmatprep.subr.bf16.mxu0 %v1989_v3 }
 0x79e   :  { %1737 = vmatmul.mubr.msk.f32.vlgmr.msra.gmra.mrb[12].mxu0 %vm42_vm1, %v1932_v35 }
 0x79f   :  { %1892 = vmatpush3.bf16.msra.mxu0 %v2082_v12  ;;  %1755 = vmatprep.mubr.msk.f32.mxu0 %vm1990_vm0, %v1991_v6  ;;  %v1402_v6 = vld [vmem:[%s2342_s0 + $0xe] sm:$0x3]  ;;  %s1993_s0 = smov [#allocation2]  }
 0x7a0   :  { %1893 = vmatprep.subr.bf16.mxu0 %v1989_v3  ;;  %s1349_s30 = sshll.u32 %s1993_s0, 4  ;;  %s1350_s30 = int_to_ptr.vmem [resolvable:$true] %s1349_s30 }
 0x7a1   :  { %s1941_s8 = scalar_lea.vmem %s1350_s30, 256  ;;  %p1946_p1 = scmp.lt.s32.totalorder %s1350_s30, %s1350_s30 }
 0x7a2   :  { %p1942_p0 = scmp.ne.s32.totalorder %s1350_s30, %s1941_s8  ;;  %p1947_p2 = scmp.lt.s32.totalorder %s1941_s8, %s1941_s8 }
 0x7a3   :  { %1895 = vmatpush3.bf16.msra.mxu0 %v2092_v15 }
 0x7a4   :  { %1896 = vmatprep.subr.bf16.mxu0 %v1989_v3  ;;  %p1948_p3 = por %p1947_p2, %p1946_p1 }
 0x7a6   :  { %p1949_p4 = pnand %p1948_p3, %p1942_p0 }
 0x7a7   :  { %1898 = vmatpush3.bf16.msra.mxu0 %v2102_v18 }
 0x7a8   :  { %1899 = vmatprep.subr.bf16.mxu0 %v1989_v3 }
 0x7ab   :  { %1901 = vmatpush3.bf16.msra.mxu0 %v2112_v21 }
 0x869   :  { %v1008_v8 = vpop.f32.mrb[10].mxu0 }
 0x86a   :  { %v1012_v12 = vadd.f32 %v1396_v4, %v1008_v8  ;;  %v1697_v38 = vpop.f32.mrb[11].mxu0 }
 0x86c   :  { %1933 = vtanh.f32 %v1012_v12 }
 0x871   :  { %v1252_v15 = vpop.f32.mrb[12].mxu0 }
 0x872   :  { %v1256_v39 = vadd.f32 %v1402_v6, %v1252_v15  ;;  %v1738_v40 = vpop.f32.mrb[13].mxu0 }
 0x874   :  { %1935 = vtanh.f32 %v1256_v39 }
 0x876   :  { %v1934_v18 = vpop.eup %1933 }
 0x877   :  { %1017 = vst.msk [vmem:[#allocation4 + $0xa] sm:$0x3] %vm200_vm2, %v1934_v18  ;;  %1096 = vrot.lane.b32.xlu0 %v1934_v18, %s1992_s4 }
 0x87e   :  { %v1936_v3 = vpop.eup %1935 }
 0x87f   :  { %1341 = vst.msk [vmem:[#allocation2 + $0xe] sm:$0x3] %vm200_vm2, %v1936_v3 }
 0x8e9   :  { %v1097_v21 = vpop.permute.xlu0 %1096 }
 0x8ea   :  { %v1099_v41 = vsel %vm42_vm1, %v1932_v35, %v1097_v21 }
 0x8eb   :  { %1726 = vmatmul.mubr.msk.f32.vlgmr.msra.gmra.mrb[14].mxu1 %vm124_vm3, %v1099_v41 }
 0x9be   :  { %v1171_v43 = vpop.f32.mrb[14].mxu1 }
 0x9bf   :  { %v1175_v44 = vadd.f32 %v1400_v42, %v1171_v43  ;;  %v1727_v45 = vpop.f32.mrb[15].mxu1 }
 0x9c1   :  { %1937 = vtanh.f32 %v1175_v44 }
 0x9cb   :  { %v1938_v46 = vpop.eup %1937 }
 0x9cc   :  { %1180 = vst.msk [vmem:[#allocation4 + $0xc] sm:$0x3] %vm200_vm2, %v1938_v46  ;;  %1259 = vrot.lane.b32.xlu1 %v1938_v46, %s1992_s4 }
 0xa3e   :  { %v1260_v47 = vpop.permute.xlu1 %1259 }
 0xa3f   :  { %v1262_v48 = vsel %vm42_vm1, %v1936_v3, %v1260_v47 }
 0xa40   :  { %1756 = vmatmul.mubr.msk.f32.vlgmr.msra.gmra.mrb[14].mxu0 %vm124_vm3, %v1262_v48 }
 0xa41   :  { %1952 = shalt.err (!%p1949_p4)
}
 0xa42   :  { %s1953_s3 = scalar_lea.hbm %s2348_s6, 256 }
 0xa43   :  { %p1954_p5 = scmp.ne.s32.totalorder %s2348_s6, %s1953_s3  ;;  %p1957_p6 = scmp.lt.u32.totalorder %s1953_s3, %s2348_s6 }
 0xa45   :  { %p1959_p7 = pnand %p1957_p6, %p1954_p5 }
 0xa47   :  { %1962 = shalt.err (!%p1959_p7)
}
 0xa48   :  { %s1994_s15 = smov 2   ;;  %v1404_v49 = vld [vmem:[%s2343_s1 + $0xe] sm:$0x3]  ;;  %s1995_s19 = smov [#allocation4]  }
 0xa49   :  { %1355 = dma.vmem_to_hbm [thread:$0]  %s1350_s30, 256, %s2348_s6, [#allocation3], %s1992_s4, %s1992_s4, %s1994_s15  }
 0xa4a   :  { %s1361_s20 = sshll.u32 %s1995_s19, 4  ;;  %s1362_s20 = int_to_ptr.vmem [resolvable:$true] %s1361_s20 }
 0xa4b   :  { %s1963_s21 = scalar_lea.vmem %s1362_s20, 256  ;;  %p1968_p9 = scmp.lt.s32.totalorder %s1362_s20, %s1362_s20 }
 0xa4c   :  { %p1964_p8 = scmp.ne.s32.totalorder %s1362_s20, %s1963_s21  ;;  %p1969_p10 = scmp.lt.s32.totalorder %s1963_s21, %s1963_s21 }
 0xa4e   :  { %p1970_p11 = por %p1969_p10, %p1968_p9 }
 0xa50   :  { %p1971_p12 = pnand %p1970_p11, %p1964_p8 }
 0xb13   :  { %v1334_v50 = vpop.f32.mrb[14].mxu0 }
 0xb14   :  { %v1338_v51 = vadd.f32 %v1404_v49, %v1334_v50  ;;  %v1757_v52 = vpop.f32.mrb[15].mxu0 }
 0xb16   :  { %1939 = vtanh.f32 %v1338_v51 }
 0xb20   :  { %v1940_v53 = vpop.eup %1939 }
 0xb21   :  { %1343 = vst.msk [vmem:[#allocation4 + $0xe] sm:$0x3] %vm200_vm2, %v1940_v53 }
 0xb22   :  { %1974 = shalt.err (!%p1971_p12)
}
 0xb23   :  { %s1975_s1 = scalar_lea.hbm %s2349_s7, 256 }
 0xb24   :  { %p1976_p13 = scmp.ne.s32.totalorder %s2349_s7, %s1975_s1  ;;  %p1979_p0 = scmp.lt.u32.totalorder %s1975_s1, %s2349_s7 }
 0xb26   :  { %p1981_p1 = pnand %p1979_p0, %p1976_p13 }
 0xb28   :  { %1984 = shalt.err (!%p1981_p1)
}
 0xb29   :  { %1367 = dma.vmem_to_hbm [thread:$0]  %s1362_s20, 256, %s2349_s7, [#allocation5], %s1992_s4, %s1992_s4, %s1994_s15  }
 0xb2a   :  { %1985 = dma.done.wait [#allocation3], 256  }
 0xb2b   :  { %1986 = vsyncadd [#allocation3], 4294967040 }
 0xb2c   :  { %1987 = dma.done.wait [#allocation5], 256  }
 0xb2d   :  { %1988 = vsyncadd [#allocation5], 4294967040 }
 0xb2e   :  { %1374 = vsyncpa [#allocation3], 1 }
 0xb2f   :  { %1375 = vsyncpa [#allocation5], 1 }

</bundles_post_ra>
